<compile_context>
chip_gen: v7x
topology: tpu7x:2x2x1
jax: 0.10.0
libtpu: 0.0.40
codegen_flags: <defaults>
</compile_context>

<pallas_src>
import functools

import jax
import jax.numpy as jnp
import numpy as np
from jax import lax
from jax.experimental import pallas as pl
from jax.experimental.pallas import tpu as pltpu


def _edge_iou_stats_kernel(kbox_ref, o_ref, t_ref, stats_ref, *, ksq):
    """Per-block stats, stored as (Bb, C, 4) =
    [intersection, union, edge_inter, edge_union] along the last axis."""
    Bb, C, S = o_ref.shape

    logits = o_ref[...]                              # (Bb, C, S) float32
    tgt = t_ref[...]                                 # (Bb, 1, S) int32

    # --- softmax over the channel (sublane) axis; one exact divide on the
    #     (Bb,1,S) denominator row, then a broadcast multiply ---
    m = jnp.max(logits, axis=1, keepdims=True)       # (Bb, 1, S)
    e = jnp.exp(logits - m)
    inv = 1.0 / jnp.sum(e, axis=1, keepdims=True)    # (Bb, 1, S)
    p = e * inv                                      # (Bb, C, S)

    iota_c = lax.broadcasted_iota(jnp.int32, logits.shape, 1)   # (Bb, C, S)

    # --- one-hot targets ---
    onehot = (iota_c == tgt).astype(jnp.float32)     # (Bb, C, S)

    # --- argmax over raw logits (== argmax of softmax); first max wins,
    #     matching torch.argmax tie behaviour ---
    cand = jnp.where(logits == m, iota_c, C)
    pred_idx = jnp.min(cand, axis=1, keepdims=True)  # (Bb, 1, S)
    pred_oh = (iota_c == pred_idx).astype(jnp.float32)

    # --- plain IoU statistics (lane reductions over S) ---
    inter = jnp.sum(p * onehot, axis=2, keepdims=True)                 # (Bb,C,1)
    union = (jnp.sum(p, axis=2, keepdims=True)
             + jnp.sum(onehot, axis=2, keepdims=True) - inter)

    # --- fused zero-padded box-window sums for BOTH 0/1 maps of the whole
    #     batch block: ONE bf16 MXU matmul (M = Bb*2C rows) against the
    #     precomputed Kronecker band filter.  0/1 inputs + f32 accumulation
    #     keep the integer window counts exact. ---
    seg = jnp.concatenate([pred_oh, onehot], axis=1)                   # (Bb,2C,S)
    seg2 = seg.reshape(Bb * 2 * C, S)
    box2 = jnp.dot(seg2.astype(jnp.bfloat16), kbox_ref[...],
                   preferred_element_type=jnp.float32)                 # (Bb*2C,S)

    # edge_decision: avgpool(seg) != seg  <=>  window_sum != seg * k^2
    edge2 = seg2 * (box2 != seg2 * ksq).astype(jnp.float32)
    edge = edge2.reshape(Bb, 2 * C, S)
    pred_edge = edge[:, :C, :]
    targ_edge = edge[:, C:, :]

    # --- edge IoU statistics: fuse the 0/1 masks before touching p ---
    tgt_mask = onehot * targ_edge                                      # 0/1
    e_inter = jnp.sum(p * (pred_edge * tgt_mask), axis=2, keepdims=True)
    e_union = jnp.sum(tgt_mask, axis=2, keepdims=True)

    # --- single contiguous store per grid step ---
    stats_ref[...] = jnp.concatenate([inter, union, e_inter, e_union], axis=2)


def _pick_batch_block(B, C, target_m=128):
    """Largest divisor Bb of B with Bb*2C <= target_m, keeping >= 2 grid steps
    (so both v7x TensorCores get work) whenever B >= 2."""
    if (2 * C) % 8 != 0:
        # keep the in-kernel (Bb,2C,S)->(Bb*2C,S) merge a free relabel
        return 1
    bb_max = max(1, target_m // (2 * C))
    best = 1
    for bb in range(1, B + 1):
        if bb > bb_max:
            break
        if B % bb:
            continue
        if B == 1 or B // bb >= 2:
            best = bb
    return best


def edge_iou_loss(logits, targets, n_class, edge_range=3, lamda=1.0):
    """Pallas implementation of Edge_IoULoss.forward."""
    B, C, H, W = logits.shape
    assert C == n_class, "channel dim must equal n_class"
    S = H * W
    k = 2 * edge_range + 1
    Bb = _pick_batch_block(B, C)
    steps = B // Bb

    # Hoisted constant filter: zero-padded (2r+1)x(2r+1) box window sum as a
    # single (S, S) matrix = kron(band_h, band_w); entries are 0/1 (exact bf16).
    ih = np.arange(H)
    iw = np.arange(W)
    band_h = (np.abs(ih[:, None] - ih[None, :]) <= edge_range).astype(np.float32)
    band_w = (np.abs(iw[:, None] - iw[None, :]) <= edge_range).astype(np.float32)
    kbox = jnp.asarray(np.kron(band_h, band_w), dtype=jnp.bfloat16)    # (S, S)

    # Lane-dense flattened inputs (wrapper-side layout plumbing).
    logits2 = logits.astype(jnp.float32).reshape(B, C, S)
    targets2 = targets.astype(jnp.int32).reshape(B, 1, S)

    # Explicit scoped-VMEM budget: double-buffered filter + I/O blocks + f32
    # temporaries with headroom; capped at 64 MiB (v7x physical).
    need = (2 * S * S * 2
            + 2 * (Bb * C * S * 4 + Bb * S * 4 + Bb * C * 4 * 4)
            + 10 * Bb * 2 * C * S * 4)
    vmem_limit = int(min(64 * 2 ** 20, max(32 * 2 ** 20, 2 * need)))

    stats = pl.pallas_call(
        functools.partial(_edge_iou_stats_kernel, ksq=float(k * k)),
        out_shape=jax.ShapeDtypeStruct((B, C, 4), jnp.float32),
        grid_spec=pl.GridSpec(
            grid=(steps,),
            in_specs=[
                pl.BlockSpec((S, S), lambda i: (0, 0)),          # constant filter
                pl.BlockSpec((Bb, C, S), lambda i: (i, 0, 0)),   # logits
                pl.BlockSpec((Bb, 1, S), lambda i: (i, 0, 0)),   # targets
            ],
            out_specs=pl.BlockSpec((Bb, C, 4), lambda i: (i, 0, 0)),
        ),
        compiler_params=pltpu.CompilerParams(
            dimension_semantics=("parallel",),
            vmem_limit_bytes=vmem_limit),
    )(kbox, logits2, targets2)

    inter, union = stats[:, :, 0], stats[:, :, 1]
    e_inter, e_union = stats[:, :, 2], stats[:, :, 3]
    eps = 1e-24
    iou = jnp.mean((inter + eps) / (union + eps))
    e_iou = jnp.mean((e_inter + eps) / (e_union + eps))
    return 1.0 - iou + lamda * (1.0 - e_iou)


def _reference_loss(logits, targets, n_class, edge_range=3, lamda=1.0):
    """Pure-JAX reference matching the PyTorch module."""
    k = 2 * edge_range + 1
    p = jax.nn.softmax(logits, axis=1)
    onehot = jax.nn.one_hot(targets, n_class, axis=1, dtype=jnp.float32)

    inter = jnp.sum(p * onehot, axis=(2, 3))
    total = jnp.sum(p + onehot, axis=(2, 3))
    union = total - inter
    iou = jnp.mean((inter + 1e-24) / (union + 1e-24))

    pred_idx = jnp.argmax(p, axis=1)
    pred_oh = jax.nn.one_hot(pred_idx, n_class, axis=1, dtype=jnp.float32)

    def avgpool(x):
        s = lax.reduce_window(
            x, 0.0, lax.add, (1, 1, k, k), (1, 1, 1, 1),
            padding=[(0, 0), (0, 0),
                     (edge_range, edge_range), (edge_range, edge_range)])
        return s / float(k * k)

    def edge(seg):
        return seg * (avgpool(seg) != seg).astype(jnp.float32)

    out_e = p * edge(pred_oh)
    tgt_e = onehot * edge(onehot)
    e_inter = jnp.sum(out_e * tgt_e, axis=(2, 3))
    e_union = jnp.sum(tgt_e, axis=(2, 3))
    e_iou = jnp.mean((e_inter + 1e-24) / (e_union + 1e-24))
    return 1.0 - iou + lamda * (1.0 - e_iou)


if __name__ == "__main__":
    # Edge_IoULoss has no learnable parameters; only n_class / edge_range / lamda.
    B, C, H, W = 2, 4, 16, 16
    edge_range, lamda = 3, 1.0

    key = jax.random.PRNGKey(0)
    k1, k2 = jax.random.split(key)
    logits = jax.random.normal(k1, (B, C, H, W), dtype=jnp.float32)
    targets = jax.random.randint(k2, (B, H, W), 0, C, dtype=jnp.int32)

    loss = edge_iou_loss(logits, targets, n_class=C,
                         edge_range=edge_range, lamda=lamda)
    loss = jax.block_until_ready(loss)

    ref = jax.block_until_ready(
        _reference_loss(logits, targets, n_class=C,
                        edge_range=edge_range, lamda=lamda))
    np.testing.assert_allclose(np.asarray(loss), np.asarray(ref),
                               rtol=1e-5, atol=1e-6)
    print("KERNEL_OK")
</pallas_src>

<mosaic_0001>
module attributes {stable_mosaic.version = 11 : i64} {
  func.func @_edge_iou_stats_kernel(%arg0: i32, %arg1: memref<256x256xbf16, #tpu.memory_space<vmem>>, %arg2: memref<1x4x256xf32, #tpu.memory_space<vmem>>, %arg3: memref<1x1x256xi32, #tpu.memory_space<vmem>>, %arg4: memref<1x4x4xf32, #tpu.memory_space<vmem>>) attributes {dimension_semantics = [#tpu.dimension_semantics<parallel>], iteration_bounds = array<i64: 2>, scalar_prefetch = 0 : i64, scratch_operands = 0 : i64, tpu.core_type = #tpu.core_type<tc>, window_params = [{pipeline_mode = #tpu.pipeline_mode<synchronous>, transform_indices = @transform_0, window_bounds = array<i64: 256, 256>}, {transform_indices = @transform_1, window_bounds = array<i64: 1, 4, 256>}, {transform_indices = @transform_2, window_bounds = array<i64: 1, 1, 256>}, {transform_indices = @transform_3, window_bounds = array<i64: 1, 4, 4>}]} {
    %c0 = arith.constant 0 : index
    %c0_0 = arith.constant 0 : index
    %c0_1 = arith.constant 0 : index
    %0 = vector.load %arg2[%c0, %c0_0, %c0_1] : memref<1x4x256xf32, #tpu.memory_space<vmem>>, vector<1x4x256xf32>
    %c0_2 = arith.constant 0 : index
    %c0_3 = arith.constant 0 : index
    %c0_4 = arith.constant 0 : index
    %1 = vector.load %arg3[%c0_2, %c0_3, %c0_4] : memref<1x1x256xi32, #tpu.memory_space<vmem>>, vector<1x1x256xi32>
    %cst = arith.constant dense<0xFF800000> : vector<1x256xf32>
    %2 = vector.multi_reduction <maximumf>, %0, %cst [1] : vector<1x4x256xf32> to vector<1x256xf32>
    %3 = vector.shape_cast %2 : vector<1x256xf32> to vector<1x1x256xf32>
    %4 = vector.broadcast %3 : vector<1x1x256xf32> to vector<1x4x256xf32>
    %5 = arith.subf %0, %4 : vector<1x4x256xf32>
    %6 = math.exp %5 : vector<1x4x256xf32>
    %cst_5 = arith.constant dense<0.000000e+00> : vector<1x256xf32>
    %7 = vector.multi_reduction <add>, %6, %cst_5 [1] : vector<1x4x256xf32> to vector<1x256xf32>
    %8 = vector.shape_cast %7 : vector<1x256xf32> to vector<1x1x256xf32>
    %cst_6 = arith.constant 1.000000e+00 : f32
    %9 = vector.broadcast %cst_6 : f32 to vector<1x1x256xf32>
    %10 = arith.divf %9, %8 : vector<1x1x256xf32>
    %11 = vector.broadcast %10 : vector<1x1x256xf32> to vector<1x4x256xf32>
    %12 = arith.mulf %6, %11 : vector<1x4x256xf32>
    %13 = tpu.iota {dimensions = array<i32: 1>} : vector<1x4x256xi32>
    %14 = vector.broadcast %1 : vector<1x1x256xi32> to vector<1x4x256xi32>
    %15 = arith.cmpi eq, %13, %14 : vector<1x4x256xi32>
    %16 = arith.extui %15 : vector<1x4x256xi1> to vector<1x4x256xi32>
    %17 = arith.sitofp %16 : vector<1x4x256xi32> to vector<1x4x256xf32>
    %18 = vector.broadcast %3 : vector<1x1x256xf32> to vector<1x4x256xf32>
    %19 = arith.cmpf oeq, %0, %18 : vector<1x4x256xf32>
    %c4_i32 = arith.constant 4 : i32
    %20 = vector.broadcast %c4_i32 : i32 to vector<1x4x256xi32>
    %21 = arith.select %19, %13, %20 : vector<1x4x256xi1>, vector<1x4x256xi32>
    %cst_7 = arith.constant dense<2147483647> : vector<1x256xi32>
    %22 = vector.multi_reduction <minsi>, %21, %cst_7 [1] : vector<1x4x256xi32> to vector<1x256xi32>
    %23 = vector.shape_cast %22 : vector<1x256xi32> to vector<1x1x256xi32>
    %24 = vector.broadcast %23 : vector<1x1x256xi32> to vector<1x4x256xi32>
    %25 = arith.cmpi eq, %13, %24 : vector<1x4x256xi32>
    %26 = arith.extui %25 : vector<1x4x256xi1> to vector<1x4x256xi32>
    %27 = arith.sitofp %26 : vector<1x4x256xi32> to vector<1x4x256xf32>
    %28 = arith.mulf %12, %17 : vector<1x4x256xf32>
    %cst_8 = arith.constant dense<0.000000e+00> : vector<1x4xf32>
    %29 = vector.multi_reduction <add>, %28, %cst_8 [2] : vector<1x4x256xf32> to vector<1x4xf32>
    %30 = vector.shape_cast %29 : vector<1x4xf32> to vector<1x4x1xf32>
    %cst_9 = arith.constant dense<0.000000e+00> : vector<1x4xf32>
    %31 = vector.multi_reduction <add>, %12, %cst_9 [2] : vector<1x4x256xf32> to vector<1x4xf32>
    %32 = vector.shape_cast %31 : vector<1x4xf32> to vector<1x4x1xf32>
    %cst_10 = arith.constant dense<0.000000e+00> : vector<1x4xf32>
    %33 = vector.multi_reduction <add>, %17, %cst_10 [2] : vector<1x4x256xf32> to vector<1x4xf32>
    %34 = vector.shape_cast %33 : vector<1x4xf32> to vector<1x4x1xf32>
    %35 = arith.addf %32, %34 : vector<1x4x1xf32>
    %36 = arith.subf %35, %30 : vector<1x4x1xf32>
    %37 = tpu.concatenate %27, %17 in 1 : vector<1x4x256xf32>, vector<1x4x256xf32> -> vector<1x8x256xf32>
    %38 = vector.shape_cast %37 : vector<1x8x256xf32> to vector<8x256xf32>
    %39 = arith.truncf %38 : vector<8x256xf32> to vector<8x256xbf16>
    %c0_11 = arith.constant 0 : index
    %c0_12 = arith.constant 0 : index
    %40 = vector.load %arg1[%c0_11, %c0_12] : memref<256x256xbf16, #tpu.memory_space<vmem>>, vector<256x256xbf16>
    %cst_13 = arith.constant dense<0.000000e+00> : vector<8x256xf32>
    %41 = tpu.matmul %39, %40, %cst_13 {dimension_numbers = #tpu.dot_dimension_numbers<[1], [0], [0], [1], [0, 0, 1, 1], [], []>} : vector<8x256xbf16>, vector<256x256xbf16>, vector<8x256xf32> -> vector<8x256xf32>
    %cst_14 = arith.constant 4.900000e+01 : f32
    %42 = vector.broadcast %cst_14 : f32 to vector<8x256xf32>
    %43 = arith.mulf %38, %42 : vector<8x256xf32>
    %44 = arith.cmpf one, %41, %43 : vector<8x256xf32>
    %45 = arith.extui %44 : vector<8x256xi1> to vector<8x256xi32>
    %46 = arith.sitofp %45 : vector<8x256xi32> to vector<8x256xf32>
    %47 = arith.mulf %38, %46 : vector<8x256xf32>
    %48 = vector.shape_cast %47 : vector<8x256xf32> to vector<1x8x256xf32>
    %49 = vector.extract_strided_slice %48 {offsets = [0, 0, 0], sizes = [1, 4, 256], strides = [1, 1, 1]} : vector<1x8x256xf32> to vector<1x4x256xf32>
    %50 = vector.extract_strided_slice %48 {offsets = [0, 4, 0], sizes = [1, 4, 256], strides = [1, 1, 1]} : vector<1x8x256xf32> to vector<1x4x256xf32>
    %51 = arith.mulf %17, %50 : vector<1x4x256xf32>
    %52 = arith.mulf %49, %51 : vector<1x4x256xf32>
    %53 = arith.mulf %12, %52 : vector<1x4x256xf32>
    %cst_15 = arith.constant dense<0.000000e+00> : vector<1x4xf32>
    %54 = vector.multi_reduction <add>, %53, %cst_15 [2] : vector<1x4x256xf32> to vector<1x4xf32>
    %55 = vector.shape_cast %54 : vector<1x4xf32> to vector<1x4x1xf32>
    %cst_16 = arith.constant dense<0.000000e+00> : vector<1x4xf32>
    %56 = vector.multi_reduction <add>, %51, %cst_16 [2] : vector<1x4x256xf32> to vector<1x4xf32>
    %57 = vector.shape_cast %56 : vector<1x4xf32> to vector<1x4x1xf32>
    %58 = tpu.concatenate %30, %36, %55, %57 in 2 : vector<1x4x1xf32>, vector<1x4x1xf32>, vector<1x4x1xf32>, vector<1x4x1xf32> -> vector<1x4x4xf32>
    %c0_17 = arith.constant 0 : index
    %c0_18 = arith.constant 0 : index
    %c0_19 = arith.constant 0 : index
    %59 = vector.load %arg4[%c0_17, %c0_18, %c0_19] : memref<1x4x4xf32, #tpu.memory_space<vmem>>, vector<1x4x4xf32>
    tpu.vector_store %arg4[%c0_17, %c0_18, %c0_19], %58 {strides = array<i32>} : memref<1x4x4xf32, #tpu.memory_space<vmem>>, vector<1x4x4xf32>,
    return
  }
  func.func @transform_0(%arg0: i32) -> (i32, i32) {
    %c0_i32 = arith.constant 0 : i32
    %c0_i32_0 = arith.constant 0 : i32
    %c0_i32_1 = arith.constant 0 : i32
    return %c0_i32, %c0_i32_0 : i32, i32
  }
  func.func @transform_1(%arg0: i32) -> (i32, i32, i32) {
    %c0_i32 = arith.constant 0 : i32
    %c0_i32_0 = arith.constant 0 : i32
    %c0_i32_1 = arith.constant 0 : i32
    return %arg0, %c0_i32, %c0_i32_0 : i32, i32, i32
  }
  func.func @transform_2(%arg0: i32) -> (i32, i32, i32) {
    %c0_i32 = arith.constant 0 : i32
    %c0_i32_0 = arith.constant 0 : i32
    %c0_i32_1 = arith.constant 0 : i32
    return %arg0, %c0_i32, %c0_i32_0 : i32, i32, i32
  }
  func.func @transform_3(%arg0: i32) -> (i32, i32, i32) {
    %c0_i32 = arith.constant 0 : i32
    %c0_i32_0 = arith.constant 0 : i32
    %c0_i32_1 = arith.constant 0 : i32
    return %arg0, %c0_i32, %c0_i32_0 : i32, i32, i32
  }
}

</mosaic_0001>

<bundles_post_ra>
// kernel: tpu_custom_call.1
= control target key start
LH: loop header
LB: loop body
LE: loop exit
PB: predicated region body
PF: predicated region fallthrough
CT: control target
= control target key end

     0   :  { %8 = vsyncpa [#allocation3], 0  ;;  %s1337_s0 = inlined_call_operand.hbm [shape: bf16[256,256], index: 0, kind: input, shape index: {}]   ;;  %s1338_s1 = inlined_call_operand.hbm [shape: f32[2,4,256], index: 1, kind: input, shape index: {}]   ;;  %s1339_s2 = inlined_call_operand.vmem [shape: s32[2,1,256], index: 2, kind: input, shape index: {}]   ;;  %s1340_s3 = inlined_call_operand.hbm [shape: f32[2,4,4], index: 3, kind: output, shape index: {}]  }
   0x1   :  { %9 = vsyncpa [#allocation6], 0 }
   0x2   :  { %11 = vsyncpa [#allocation6 + $0x1], 0 }
   0x3   :  { %12 = vsyncpa [#allocation4], 0 }
   0x4   :  { %14 = vsyncpa [#allocation4 + $0x1], 0  ;;  %s1075_s12 = smov 0   ;;  %s1077_s13 = smov 0  }
   0x5   :  { %s1079_s14 = smov 0   ;;  %s1081_s15 = smov 0  }
   0x6 LB: > { %s1096_s16 = sadd.s32 4294967295, %s1046_s15   ;;  %s747_s17 = sadd.s32 4294967294, %s1046_s15   ;;  %s1046_s15 = sphi %s1081_s15, %s1360_s15   ;;  %s1042_s14 = sphi %s1079_s14, %s1359_s14   ;;  %s1038_s13 = sphi %s1077_s13, %s1358_s13   ;;  %s1034_s12 = sphi %s1075_s12, %s1357_s12  }
   0x7   : > { %p61_p0 = scmp.ne.s32.totalorder %s1038_s13, %s1034_s12  ;;  %p1341_p1 = scmp.eq.s32.totalorder %s1096_s16, 0 }
   0x8   : > { %p117_p3 = scmp.eq.s32.totalorder %s747_s17, 1  ;;  %p748_p5 = scmp.ge.s32.totalorder %s1046_s15, 1 }
   0x9   : > { %p1105_p4 = por %p1341_p1, %p61_p0  ;;  %p124_p7 = scmp.lt.s32.totalorder %s1046_s15, 3 }
   0xa   : > { %p1110_p6 = por %p117_p3, %p61_p0  ;;  %s1048_s21 = smov [#allocation2]  }
   0xb   : > { %s1344_s18 = scalar_select %p1105_p4, 1, 0 }
   0xc   : > { %s1345_s19 = scalar_select %p1110_p6, 1, 0 }
   0xd   : > { %p1115_p8 = pnand %p748_p5, %p124_p7  ;;  %s136_s22 = sshll.u32 %s1048_s21, 4  ;;  %s1119_s22 = int_to_ptr.vmem [resolvable:$true] %s136_s22 }
   0xe   : > { %s1131_s24 = sadd.s32 1, %s1046_s15   ;;  %s48_s25 = sadd.s32 1, %s1042_s14 }
   0xf   : > { %s1346_s20 = scalar_select %p1115_p8, 1, 0 }
  0x10   : > { %p810_p9 = pneg %p1115_p8  ;;  %s45_s26 = ssub.s32 %s1046_s15, %s1131_s24 }
  0x11   : > { %s918_s29 = scalar_lea.hbm %s1337_s0, 4096 }
  0x12   : > { %p1126_p11 = pnand %p810_p9, %p1341_p1  ;;  %p919_p12 = scmp.ne.s32.totalorder %s1337_s0, %s918_s29 }
  0x13   : > { %p925_p5 = scmp.lt.u32.totalorder %s918_s29, %s1337_s0 }
  0x14   : > { %p920_p13 = pneg %p1126_p11 }
  0x16   : > { %p921_p0 = pnand %p920_p13, %p919_p12 }
  0x18   : > { %p922_p3 = pneg %p921_p0 }
  0x1a   : > { %p927_p7 = pnand %p925_p5, %p922_p3 }
  0x1c   : > { %930 = shalt.err (!%p927_p7)
}
  0x1d   : > { %s931_s7 = scalar_lea.vmem %s1119_s22, 4096  ;;  %p939_p2 = scmp.lt.s32.totalorder %s1119_s22, %s1119_s22 }
  0x1e   : > { %p932_p9 = scmp.ne.s32.totalorder %s1119_s22, %s931_s7  ;;  %p940_p6 = scmp.lt.s32.totalorder %s931_s7, %s931_s7 }
  0x20   : > { %p934_p10 = pnand %p932_p9, %p920_p13  ;;  %p941_p4 = por %p940_p6, %p939_p2 }
  0x22   : > { %p935_p1 = pneg %p934_p10 }
  0x24   : > { %p942_p8 = pnand %p941_p4, %p935_p1 }
  0x26   : > { %945 = shalt.err (!%p942_p8)
}
  0x27   : > { %s1049_s8 = smov 128   ;;  %s1050_s9 = smov 8  }
  0x28   : > { %813 = dma.hbm_to_vmem [thread:$0]  (!%p1126_p11), %s1337_s0, 4096, %s1119_s22, [#allocation3], %s1049_s8, %s1049_s8, %s1050_s9  }
  0x29   : > { %p46_p2 = scmp.eq.s32.totalorder %s45_s26, 0  ;;  %p55_p1 = scmp.ne.s32.totalorder %s1042_s14, %s1038_s13 }
  0x2a   : > { %p56_p4 = scmp.eq.s32.totalorder %s1046_s15, 0  ;;  %p823_p6 = scmp.lt.s32.totalorder %s1046_s15, 2 }
  0x2b   : > { %s1162_s17 = scalar_select %p46_p2, %s1042_s14, %s48_s25  }
  0x2c   : > { %p57_p8 = por %p56_p4, %p55_p1  ;;  %p1348_p10 = scmp.eq.s32.totalorder %s1096_s16, 1 }
  0x2d   : > { %s150_s27 = sand.u32 1, %s1042_s14   ;;  %s801_s28 = sshll.u32 %s1046_s15, 7 }
  0x2e   : > { %p1166_p12 = por %p1348_p10, %p55_p1  ;;  %s751_s29 = sshll.u32 %s150_s27, 3 }
  0x2f   : > { %s1175_s4 = scalar_lea.hbm %s1338_s1, %s801_s28  ;;  %s154_s22 = scalar_lea.vmem [#allocation5], %s751_s29 }
  0x30   : > { %s162_s25 = sshll.u32 %s154_s22, 4  ;;  %p1177_p11 = pnand %p823_p6, %p57_p8  ;;  %s1181_s25 = int_to_ptr.vmem [resolvable:$true] %s162_s25 }
  0x31   : > { %s151_s5 = scalar_lea.sflag [#allocation6], %s150_s27  ;;  %s946_s6 = scalar_lea.hbm %s1175_s4, 128 }
  0x32   : > { %p947_p13 = scmp.ne.s32.totalorder %s1175_s4, %s946_s6  ;;  %p948_p0 = pneg %p1177_p11 }
  0x33   : > { %s951_s9 = scalar_lea.hbm %s1338_s1, 256  ;;  %p952_p7 = scmp.lt.u32.totalorder %s1175_s4, %s1338_s1 }
  0x34   : > { %p949_p3 = pnand %p948_p0, %p947_p13  ;;  %p953_p9 = scmp.lt.u32.totalorder %s951_s9, %s946_s6 }
  0x35   : > { %p955_p1 = scmp.lt.u32.totalorder %s946_s6, %s1175_s4 }
  0x36   : > { %p950_p5 = pneg %p949_p3  ;;  %p954_p2 = por %p953_p9, %p952_p7 }
  0x38   : > { %p956_p4 = por %p955_p1, %p954_p2 }
  0x3a   : > { %p957_p6 = pnand %p956_p4, %p950_p5 }
  0x3c   : > { %960 = shalt.err (!%p957_p6)
}
  0x3d   : > { %s961_s27 = scalar_lea.vmem %s1181_s25, 128  ;;  %s1051_s28 = smov [#allocation5]  }
  0x3e   : > { %p962_p8 = scmp.ne.s32.totalorder %s1181_s25, %s961_s27  ;;  %s966_s29 = sshll.u32 %s1051_s28, 4  ;;  %s967_s29 = int_to_ptr.vmem [resolvable:$false] %s966_s29 }
  0x3f   : > { %s968_s23 = scalar_lea.vmem %s967_s29, 256  ;;  %p969_p3 = scmp.lt.s32.totalorder %s1181_s25, %s967_s29 }
  0x40   : > { %p964_p10 = pnand %p962_p8, %p948_p0  ;;  %p970_p7 = scmp.lt.s32.totalorder %s968_s23, %s961_s27 }
  0x42   : > { %p965_p13 = pneg %p964_p10  ;;  %p971_p9 = por %p970_p7, %p969_p3 }
  0x44   : > { %p972_p2 = pnand %p971_p9, %p965_p13 }
  0x46   : > { %975 = shalt.err (!%p972_p2)
}
  0x47   : > { %817 = dma.hbm_to_vmem [thread:$0]  (!%p1177_p11), %s1175_s4, 128, %s1181_s25, %s151_s5  }
  0x48   : > { %p1351_p5 = scmp.ne.s32.totalorder %s1346_s20, 0 }
  0x49   : > { %p1352_p0 = scmp.eq.s32.totalorder (!%p1351_p5), %s1096_s16, 0 }
  0x4a   : > { %178 = sbr.rel (%p1351_p5) target bundleno = 541 (0x21d), region = 32 }
  0x51   : > { %1021 = dma.done.wait (%p1352_p0), [#allocation3], 4096   ;;  %p1353_p1 = pmov %p1352_p0 }
  0x52   : > { %s1215_s30 = sand.u32 1, %s1038_s13   ;;  %p1354_p4 = scmp.ne.s32.totalorder %s1344_s18, 0 }
  0x53   : > { %1023 = vsyncadd (%p1353_p1), [#allocation3], 4294963200  ;;  %s756_s22 = sshll.u32 %s1215_s30, 3  ;;  %s185_s26 = scalar_lea.sflag [#allocation6], %s1215_s30 }
  0x54   : > { %s188_s6 = scalar_lea.vmem [#allocation5], %s756_s22 }
  0x55   : > { %1025 = dma.done.wait (%p1354_p4), %s185_s26, 128  }
  0x56   : > { %1027 = vsyncadd (%p1354_p4), %s185_s26, 4294967168  ;;  %v863_v0 = vld [vmem:[#allocation2 + $0x4] ss:$8 sps:$4 sm:$0xff]   ;;  %v865_v1 = vld [vmem:[#allocation2] ss:$8 sps:$4 sm:$0xff]   ;;  %vm224_vm0 = vcmask 1043456   ;;  %v272_v20 = vlaneseq }
  0x57   : > { %552 = vmatprep.subr.bf16.mxu0 %v863_v0  ;;  %v866_v2 = vld [vmem:[#allocation2 + $0x14] ss:$8 sps:$4 sm:$0xff]   ;;  %v868_v3 = vld [vmem:[#allocation2 + $0x10] ss:$8 sps:$4 sm:$0xff]   ;;  %v869_v4 = vld [vmem:[#allocation2 + $0x24] ss:$8 sps:$4 sm:$0xff]  }
  0x58   : > { %553 = vmatpush1.bf16.msra.mxu0 %v865_v1  ;;  %v871_v5 = vld [vmem:[#allocation2 + $0x20] ss:$8 sps:$4 sm:$0xff]   ;;  %v872_v6 = vld [vmem:[#allocation2 + $0x34] ss:$8 sps:$4 sm:$0xff]   ;;  %v874_v7 = vld [vmem:[#allocation2 + $0x30] ss:$8 sps:$4 sm:$0xff]  }
  0x59   : > { %554 = vmatprep.subr.bf16.mxu0 %v866_v2  ;;  %v875_v8 = vld [vmem:[#allocation2 + $0x44] ss:$8 sps:$4 sm:$0xff]   ;;  %v877_v9 = vld [vmem:[#allocation2 + $0x40] ss:$8 sps:$4 sm:$0xff]   ;;  %v878_v10 = vld [vmem:[#allocation2 + $0x54] ss:$8 sps:$4 sm:$0xff]  }
  0x5a   : > { %v880_v11 = vld [vmem:[#allocation2 + $0x50] ss:$8 sps:$4 sm:$0xff]   ;;  %v881_v12 = vld [vmem:[#allocation2 + $0x64] ss:$8 sps:$4 sm:$0xff]   ;;  %v883_v16 = vld [vmem:[#allocation2 + $0x60] ss:$8 sps:$4 sm:$0xff]  }
  0x5b   : > { %v1223_v13 = vld [vmem:[%s188_s6] sm:$0xff]  ;;  %v884_v18 = vld [vmem:[#allocation2 + $0x74] ss:$8 sps:$4 sm:$0xff]   ;;  %v1052_v21 = vmov 839922192   ;;  %p215_p11 = scmp.lt.s32.totalorder %s1096_s16, 1 }
  0x5c   : > { %555 = vmatpush1.bf16.msra.mxu0 %v868_v3  ;;  %v222_v14 = vcombine.high %v1223_v13, %v1223_v13  ;;  %v225_v15 = vsel %vm224_vm0, %v1223_v13, -inf  ;;  %v290_v22 = vunpack.c.l.s4 %v1052_v21  ;;  %v886_v25 = vld [vmem:[#allocation2 + $0x70] ss:$8 sps:$4 sm:$0xff]   ;;  %v887_v28 = vld [vmem:[#allocation2 + $0x84] ss:$8 sps:$4 sm:$0xff]   ;;  %v1231_v29 = vshrl.u32 %v272_v20, 7 }
  0x5d   : > { %556 = vmatprep.subr.bf16.mxu0 %v869_v4  ;;  %v226_v17 = vrot.slane %v225_v15, 4  ;;  %v889_v33 = vld [vmem:[#allocation2 + $0x80] ss:$8 sps:$4 sm:$0xff]   ;;  %s216_s18 = scalar_select %p215_p11, %s1096_s16, 1  ;;  %v890_v36 = vld [vmem:[#allocation2 + $0x94] ss:$8 sps:$4 sm:$0xff]  }
  0x5e   : > { %v232_v19 = vsel %vm224_vm0, %v222_v14, -inf  ;;  %v291_v30 = vunpack.c.0.s8 %v290_v22  ;;  %v892_v40 = vld [vmem:[#allocation2 + $0x90] ss:$8 sps:$4 sm:$0xff]   ;;  %v893_v42 = vld [vmem:[#allocation2 + $0xa4] ss:$8 sps:$4 sm:$0xff]   ;;  %v280_v48 = vsub.s32 1, %v1231_v29 }
  0x5f   : > { %v227_v23 = vmax.f32 %v225_v15, %v226_v17  ;;  %v233_v24 = vrot.slane %v232_v19, 4  ;;  %s758_s20 = sshll.u32 %s216_s18, 1  ;;  %v895_v45 = vld [vmem:[#allocation2 + $0xa0] ss:$8 sps:$4 sm:$0xff]   ;;  %v896_v47 = vld [vmem:[#allocation2 + $0xb4] ss:$8 sps:$4 sm:$0xff]  }
  0x60   : > { %557 = vmatpush1.bf16.msra.mxu0 %v871_v5  ;;  %v294_v37 = vsub.s32 %v291_v30, %v1231_v29  ;;  %s218_s5 = scalar_lea.vmem %s1339_s2, %s758_s20  ;;  %v276_v51 = vsub.s32 0, %v1231_v29  ;;  %v898_v55 = vld [vmem:[#allocation2 + $0xb0] ss:$8 sps:$4 sm:$0xff]   ;;  %v899_v57 = vld [vmem:[#allocation2 + $0xc4] ss:$8 sps:$4 sm:$0xff]   ;;  %s757_s7 = sshll.u32 %s1215_s30, 2 }
  0x61   : > { %558 = vmatprep.subr.bf16.mxu0 %v872_v6  ;;  %v228_v26 = vrot.slane %v227_v23, 2  ;;  %v234_v27 = vmax.f32 %v232_v19, %v233_v24  ;;  %v220_v50 = vld [vmem:[%s218_s5] sm:$0x3]  ;;  %v902_v1 = vld [vmem:[#allocation2 + $0xd4] ss:$8 sps:$4 sm:$0xff]   ;;  %v1053_v6 = vmov 0.0  }
  0x62   : > { %v295_v43 = vrot.slane %v1231_v29, %v294_v37  ;;  %v281_v58 = vrot.slane %v220_v50, %v280_v48  ;;  %v277_v60 = vrot.slane %v220_v50, %v276_v51  ;;  %v901_v63 = vld [vmem:[#allocation2 + $0xc0] ss:$8 sps:$4 sm:$0xff]   ;;  %v904_v5 = vld [vmem:[#allocation2 + $0xd0] ss:$8 sps:$4 sm:$0xff]   ;;  %vm631_vm14 = vcmask 7168   ;;  %s798_s8 = sshll.u32 %s1096_s16, 6 }
  0x63   : > { %v229_v31 = vmax.f32 %v227_v23, %v228_v26  ;;  %v235_v32 = vrot.slane %v234_v27, 2  ;;  %v907_v15 = vld [vmem:[#allocation2 + $0xe0] ss:$8 sps:$4 sm:$0xff]   ;;  %v910_v22 = vld [vmem:[#allocation2 + $0xf0] ss:$8 sps:$4 sm:$0xff]   ;;  %vm633_vm15 = vcmask 15360   ;;  %s1293_s28 = scalar_lea.hbm %s1340_s3, %s798_s8 }
  0x64   : > { %559 = vmatpush1.bf16.msra.mxu0 %v874_v7  ;;  %vm283_vm4 = vcmp.eq.s32.totalorder %v1231_v29, %v281_v58  ;;  %vm282_vm6 = vcmp.eq.s32.totalorder %v1231_v29, %v277_v60  ;;  %s214_s9 = scalar_lea.vmem [#allocation7], %s757_s7  ;;  %s640_s16 = scalar_lea.sflag [#allocation4], %s1215_s30 }
  0x65   : > { %560 = vmatprep.subr.bf16.mxu0 %v875_v8  ;;  %v230_v34 = vrot.slane %v229_v31, 1  ;;  %v236_v35 = vmax.f32 %v234_v27, %v235_v32  ;;  %v1252_v7 = vsel %vm283_vm4, 1.0, %v1053_v6  ;;  %s653_s10 = sshll.u32 %s214_s9, 4  ;;  %s1054_s23 = smov [#allocation7]   ;;  %s1295_s10 = int_to_ptr.vmem [resolvable:$true] %s653_s10 }
  0x66   : > { %v353_v14 = vrot.slane %v1252_v7, 4  ;;  %s976_s29 = scalar_lea.vmem %s1295_s10, 64  ;;  %s980_s22 = sshll.u32 %s1054_s23, 4  ;;  %s981_s22 = int_to_ptr.vmem [resolvable:$false] %s980_s22 }
  0x67   : > { %v231_v38 = vmax.f32 %v229_v31, %v230_v34  ;;  %v237_v39 = vrot.slane %v236_v35, 1  ;;  %p977_p6 = scmp.ne.s32.totalorder %s1295_s10, %s976_s29  ;;  %s982_s26 = scalar_lea.vmem %s981_s22, 128 }
  0x68   : > { %561 = vmatpush1.bf16.msra.mxu0 %v877_v9  ;;  %v905_v9 = vld [vmem:[#allocation2 + $0xe4] ss:$8 sps:$4 sm:$0xff]   ;;  %p983_p13 = scmp.lt.s32.totalorder %s1295_s10, %s981_s22  ;;  %p984_p3 = scmp.lt.s32.totalorder %s982_s26, %s976_s29 }
  0x69   : > { %562 = vmatprep.subr.bf16.mxu0 %v878_v10  ;;  %v238_v41 = vmax.f32 %v236_v35, %v237_v39  ;;  %p978_p8 = pnand %p977_p6, %p1166_p12 }
  0x6a   : > { %p985_p7 = por %p984_p3, %p983_p13 }
  0x6b   : > { %v1236_v44 = vcombine.low %v231_v38, %v238_v41  ;;  %p979_p10 = pneg %p978_p8 }
  0x6c   : > { %563 = vmatpush1.bf16.msra.mxu0 %v880_v11  ;;  %v1255_v11 = vsel %vm282_vm6, 1.0, %v1053_v6 }
  0x6d   : > { %564 = vmatprep.subr.bf16.mxu0 %v881_v12  ;;  %v243_v46 = vsub.f32 %v1223_v13, %v1236_v44  ;;  %vm288_vm1 = vcmp.eq.f32.partialorder %v1223_v13, %v1236_v44  ;;  %v352_v17 = vrot.slane %v1255_v11, 4  ;;  %v326_v50 = vcombine.low %v1255_v11, %v1252_v7  ;;  %p986_p9 = pnand %p985_p7, %p979_p10 }
  0x6e   : > { %v296_v49 = vsel %vm288_vm1, %v295_v43, 4  ;;  %v345_v51 = vsel %vm224_vm0, %v1255_v11, 0.0  ;;  %vm635_vm1 = vcmask 23552  }
  0x6f   : > { %v297_v52 = vcombine.high %v296_v49, %v296_v49  ;;  %v298_v53 = vsel %vm224_vm0, %v296_v49, 2147483647  ;;  %v244_v26 = vmul.f32 1.442695, %v243_v46 }
  0x70   : > { %565 = vmatpush1.bf16.msra.mxu0 %v883_v16  ;;  %v299_v54 = vrot.slane %v298_v53, 4 }
  0x71   : > { %566 = vmatprep.subr.bf16.mxu0 %v884_v18  ;;  %v308_v56 = vsel %vm224_vm0, %v297_v52, 2147483647  ;;  %v908_v18 = vld [vmem:[#allocation2 + $0xf4] ss:$8 sps:$4 sm:$0xff]   ;;  %912 = vpow2.f32 %v244_v26  ;;  %v346_v52 = vsel %vm224_vm0, %v1252_v7, 0.0 }
  0x72   : > { %v309_v59 = vrot.slane %v308_v56, 4  ;;  %vm300_vm2 = vcmp.lt.s32.totalorder %v298_v53, %v299_v54 }
  0x73   : > { %v301_v61 = vsel %vm300_vm2, %v298_v53, %v299_v54  ;;  %v347_v53 = vadd.f32 %v346_v52, %v345_v51  ;;  %vm637_vm2 = vcmask 27648  }
  0x74   : > { %567 = vmatpush1.bf16.msra.mxu0 %v886_v25  ;;  %vm310_vm3 = vcmp.lt.s32.totalorder %v308_v56, %v309_v59  ;;  %v302_v62 = vrot.slane %v301_v61, 2 }
  0x75   : > { %568 = vmatprep.subr.bf16.mxu0 %v887_v28  ;;  %v311_v0 = vsel %vm310_vm3, %v308_v56, %v309_v59 }
  0x76   : > { %v312_v2 = vrot.slane %v311_v0, 2  ;;  %vm303_vm5 = vcmp.lt.s32.totalorder %v301_v61, %v302_v62 }
  0x77   : > { %v304_v3 = vsel %vm303_vm5, %v301_v61, %v302_v62 }
  0x78   : > { %569 = vmatpush1.bf16.msra.mxu0 %v889_v33  ;;  %vm313_vm7 = vcmp.lt.s32.totalorder %v311_v0, %v312_v2  ;;  %v305_v4 = vrot.slane %v304_v3, 1 }
  0x79   : > { %570 = vmatprep.subr.bf16.mxu0 %v890_v36  ;;  %v314_v8 = vsel %vm313_vm7, %v311_v0, %v312_v2 }
  0x7a   : > { %v315_v10 = vrot.slane %v314_v8, 1  ;;  %vm306_vm8 = vcmp.lt.s32.totalorder %v304_v3, %v305_v4 }
  0x7b   : > { %v307_v12 = vsel %vm306_vm8, %v304_v3, %v305_v4  ;;  %v913_v27 = vpop.eup %912 }
  0x7c   : > { %571 = vmatpush1.bf16.msra.mxu0 %v892_v40  ;;  %vm316_vm9 = vcmp.lt.s32.totalorder %v314_v8, %v315_v10  ;;  %vm318_vm10 = vcmp.eq.s32.totalorder %v1231_v29, %v307_v12  ;;  %v247_v28 = vcombine.high %v913_v27, %v913_v27 }
  0x7d   : > { %572 = vmatprep.subr.bf16.mxu0 %v893_v42  ;;  %v317_v16 = vsel %vm316_vm9, %v314_v8, %v315_v10  ;;  %v761_v19 = vsel %vm318_vm10, 1.0, %v1053_v6 }
  0x7e   : > { %vm319_vm11 = vcmp.eq.s32.totalorder %v1231_v29, %v317_v16  ;;  %v356_v24 = vsel %vm224_vm0, %v761_v19, %v352_v17  ;;  %v249_v29 = vsel %vm224_vm0, %v913_v27, 0.0  ;;  %v256_v30 = vsel %vm224_vm0, %v247_v28, 0.0 }
  0x7f   : > { %v762_v20 = vsel %vm319_vm11, 1.0, %v1053_v6  ;;  %v358_v25 = vpack.c.bf16 %v356_v24, %v356_v24  ;;  %v250_v31 = vrot.slane %v249_v29, 4  ;;  %v257_v32 = vrot.slane %v256_v30, 4 }
  0x80   : > { %573 = vmatpush1.bf16.msra.mxu0 %v895_v45  ;;  %v357_v21 = vsel %vm224_vm0, %v762_v20, %v353_v14  ;;  %v593_v59 = vmul.f32 49.0, %v356_v24 }
  0x81   : > { %574 = vmatprep.subr.bf16.mxu0 %v896_v47  ;;  %v359_v23 = vpack.c.bf16 %v357_v21, %v357_v21  ;;  %v251_v33 = vadd.f32 %v250_v31, %v249_v29  ;;  %v258_v34 = vadd.f32 %v257_v32, %v256_v30  ;;  %v594_v60 = vmul.f32 49.0, %v357_v21 }
  0x83   : > { %584 = vmatprep.mubr.bf16.mxu0 %v359_v23  ;;  %v252_v35 = vrot.slane %v251_v33, 2  ;;  %v259_v36 = vrot.slane %v258_v34, 2 }
  0x84   : > { %575 = vmatpush1.bf16.msra.mxu0 %v898_v55 }
  0x85   : > { %576 = vmatprep.subr.bf16.mxu0 %v899_v57  ;;  %v253_v37 = vadd.f32 %v252_v35, %v251_v33  ;;  %v260_v38 = vadd.f32 %v259_v36, %v258_v34 }
  0x87   : > { %v254_v39 = vrot.slane %v253_v37, 1  ;;  %v261_v40 = vrot.slane %v260_v38, 1 }
  0x88   : > { %577 = vmatpush1.bf16.msra.mxu0 %v901_v63 }
  0x89   : > { %578 = vmatprep.subr.bf16.mxu0 %v902_v1  ;;  %v255_v41 = vadd.f32 %v254_v39, %v253_v37  ;;  %v262_v13 = vadd.f32 %v261_v40, %v260_v38 }
  0x8b   : > { %914 = vrcp.f32 %v255_v41 }
  0x8c   : > { %579 = vmatpush1.bf16.msra.mxu0 %v904_v5  ;;  %916 = vrcp.f32 %v262_v13 }
  0x8d   : > { %580 = vmatprep.subr.bf16.mxu0 %v905_v9 }
  0x90   : > { %581 = vmatpush1.bf16.msra.mxu0 %v907_v15 }
  0x91   : > { %582 = vmatprep.subr.bf16.mxu0 %v908_v18 }
  0x94   : > { %583 = vmatpush1.bf16.msra.mxu0 %v910_v22 }
  0x95   : > { %v915_v42 = vpop.eup %914 }
  0x96   : > { %v917_v43 = vpop.eup %916 }
  0x97   : > { %585 = vmatmul.mubr.bf16.vlgmr.msra.gmra.mrb[0].mxu0 %v358_v25  ;;  %v269_v44 = vcombine.low %v915_v42, %v917_v43 }
  0x99   : > { %v271_v45 = vmul.f32 %v913_v27, %v269_v44 }
  0x9b   : > { %v338_v46 = vcombine.high %v271_v45, %v271_v45  ;;  %v340_v47 = vsel %vm224_vm0, %v271_v45, 0.0  ;;  %v328_v54 = vmul.f32 %v326_v50, %v271_v45 }
  0x9d   : > { %v341_v48 = vsel %vm224_vm0, %v338_v46, 0.0  ;;  %v330_v55 = vcombine.high %v328_v54, %v328_v54  ;;  %v332_v56 = vsel %vm224_vm0, %v328_v54, 0.0 }
  0x9e   : > { %v342_v49 = vadd.f32 %v341_v48, %v340_v47 }
  0x9f   : > { %v333_v57 = vsel %vm224_vm0, %v330_v55, 0.0 }
  0xa0   : > { %343 = vadd.xlane.f32.xlu0 %v342_v49  ;;  %v334_v58 = vadd.f32 %v333_v57, %v332_v56 }
  0xa2   : > { %335 = vadd.xlane.f32.xlu1 %v334_v58 }
  0xa4   : > { %348 = vadd.xlane.f32.xlu0 %v347_v53 }
 0x16a   : > { %v586_v61 = vpop.f32.mrb[0].mxu0 }
 0x16b   : > { %vm595_vm12 = vcmp.ne.f32.partialorder %v586_v61, %v593_v59  ;;  %v588_v62 = vpop.f32.mrb[1].mxu0 }
 0x16c   : > { %v795_v63 = vsel %vm595_vm12, 1.0, %v1053_v6  ;;  %vm596_vm13 = vcmp.ne.f32.partialorder %v588_v62, %v594_v60  ;;  %v590_v0 = vpop.f32.mrb[2].mxu0 }
 0x16d   : > { %v601_v1 = vmul.f32 %v795_v63, %v356_v24  ;;  %v796_v2 = vsel %vm596_vm13, 1.0, %v1053_v6  ;;  %v591_v3 = vpop.f32.mrb[3].mxu0  ;;  %v336_v24 = vpop.xlane.xlu1 %335 }
 0x16e   : > { %v602_v4 = vmul.f32 %v796_v2, %v357_v21 }
 0x16f   : > { %v605_v5 = vrot.slane %v601_v1, 4 }
 0x170   : > { %v606_v8 = vrot.slane %v602_v4, 4 }
 0x171   : > { %v609_v9 = vmul.f32 %v1255_v11, %v605_v5 }
 0x172   : > { %v610_v10 = vmul.f32 %v1252_v7, %v606_v8  ;;  %v344_v7 = vpop.xlane.xlu0 %343 }
 0x173   : > { %v611_v12 = vmul.f32 %v609_v9, %v601_v1  ;;  %v626_v14 = vsel %vm224_vm0, %v609_v9, 0.0 }
 0x174   : > { %v612_v15 = vmul.f32 %v610_v10, %v602_v4  ;;  %v627_v16 = vsel %vm224_vm0, %v610_v10, 0.0 }
 0x175   : > { %v628_v17 = vadd.f32 %v627_v16, %v626_v14 }
 0x176   : > { %v615_v18 = vcombine.low %v611_v12, %v612_v15  ;;  %v349_v22 = vpop.xlane.xlu0 %348 }
 0x177   : > { %629 = vadd.xlane.f32.xlu0 %v628_v17  ;;  %v350_v23 = vadd.f32 %v349_v22, %v344_v7 }
 0x178   : > { %v617_v6 = vmul.f32 %v615_v18, %v271_v45 }
 0x179   : > { %v351_v25 = vsub.f32 %v350_v23, %v336_v24 }
 0x17a   : > { %v619_v19 = vcombine.high %v617_v6, %v617_v6  ;;  %v621_v20 = vsel %vm224_vm0, %v617_v6, 0.0 }
 0x17b   : > { %v632_v26 = vsel %vm631_vm14, %v336_v24, %v351_v25 }
 0x17c   : > { %v622_v21 = vsel %vm224_vm0, %v619_v19, 0.0 }
 0x17d   : > { %v623_v11 = vadd.f32 %v622_v21, %v621_v20 }
 0x17f   : > { %624 = vadd.xlane.f32.xlu1 %v623_v11 }
 0x204   : > { %v630_v28 = vpop.xlane.xlu0 %629 }
 0x20c   : > { %v625_v27 = vpop.xlane.xlu1 %624 }
 0x20d   : > { %v634_v29 = vsel %vm633_vm15, %v632_v26, %v625_v27 }
 0x20e   : > { %v636_v30 = vsel %vm635_vm1, %v634_v29, %v630_v28 }
 0x20f   : > { %638 = vst.msk [vmem:[%s214_s9] sm:$0xf] %vm637_vm2, %v636_v30 }
 0x210   : > { %989 = shalt.err (!%p986_p9)
}
 0x211   : > { %s990_s30 = scalar_lea.hbm %s1293_s28, 64  ;;  %s994_s20 = scalar_lea.hbm %s1340_s3, 128 }
 0x212   : > { %p991_p2 = scmp.ne.s32.totalorder %s1293_s28, %s990_s30  ;;  %p995_p1 = scmp.lt.u32.totalorder %s1293_s28, %s1340_s3 }
 0x213   : > { %p996_p4 = scmp.lt.u32.totalorder %s994_s20, %s990_s30  ;;  %p998_p6 = scmp.lt.u32.totalorder %s990_s30, %s1293_s28 }
 0x214   : > { %p992_p5 = pnand %p991_p2, %p1166_p12 }
 0x215   : > { %p997_p11 = por %p996_p4, %p995_p1 }
 0x216   : > { %p993_p0 = pneg %p992_p5 }
 0x217   : > { %p999_p8 = por %p998_p6, %p997_p11 }
 0x219   : > { %p1000_p10 = pnand %p999_p8, %p993_p0 }
 0x21b   : > { %1003 = shalt.err (!%p1000_p10)
}
 0x21c   : > { %808 = dma.vmem_to_hbm [thread:$0]  (%p1166_p12), %s1295_s10, 64, %s1293_s28, %s640_s16  }
 0x21d PF: > { %s665_s5 = sand.u32 1, %s1034_s12   ;;  %p1355_p13 = scmp.ne.s32.totalorder %s1345_s19, 0 }
 0x21e   : > { %p1356_p3 = scmp.ge.s32.totalorder %s1046_s15, 2  ;;  %s666_s7 = scalar_lea.sflag [#allocation4], %s665_s5 }
 0x220   : > { %p819_p7 = pnand %p1356_p3, %p1355_p13 }
 0x222   : > { %1029 = dma.done.wait (!%p819_p7), %s666_s7, 64  }
 0x223   : > { %1031 = vsyncadd (!%p819_p7), %s666_s7, 4294967232  ;;  %p17_p9 = scmp.ge.s32.totalorder %s1131_s24, 4   ;;  %s1357_s12 = smov %s1038_s13 }
 0x224   : > { %s1358_s13 = smov %s1042_s14  ;;  %s1359_s14 = smov %s1162_s17 }
 0x225   : > { %s1360_s15 = smov %s1131_s24  ;;  %19 = sbr.rel (!%p17_p9) target bundleno = 6 (0x6), region = 85 }
 0x22c   :  { %671 = vsyncpa [#allocation3], 1 }
 0x22d   :  { %673 = vsyncpa [#allocation3 + $0x1], 1 }
 0x22e   :  { %674 = vsyncpa [#allocation6], 1 }
 0x22f   :  { %676 = vsyncpa [#allocation6 + $0x1], 1 }
 0x230   :  { %677 = vsyncpa [#allocation4], 1 }
 0x231   :  { %679 = vsyncpa [#allocation4 + $0x1], 1 }

</bundles_post_ra>
